<compile_context>
chip_gen: v5e
topology: v5e:2x2
jax: 0.10.0
libtpu: 0.0.40
codegen_flags: <defaults>
</compile_context>

<pallas_src>
import jax
import jax.numpy as jnp
from jax.experimental import pallas as pl
from jax.experimental.pallas import tpu as pltpu


def _round_up(x, m):
    return ((x + m - 1) // m) * m


def _pick_tile(dim, candidates, align):
    """Pick a tile size along one axis.

    If the whole axis fits in the largest candidate, use a single aligned tile
    (minimal padding for small / ragged dims).  Otherwise use the largest
    candidate whose zero-padding waste is <= dim/8, else the candidate that
    minimizes the padded extent.
    """
    if dim <= candidates[0]:
        return _round_up(dim, align)
    for t in candidates:
        if (_round_up(dim, t) - dim) * 8 <= dim:
            return t
    return min(candidates, key=lambda t: _round_up(dim, t))


# --------------------------------------------------------------------------
# Prologue: inv_norm[h] = 1 / sum_n V[n, h]^2   (reduction over ALL N rows)
# --------------------------------------------------------------------------
def _inv_col_norm_kernel(v_ref, inv_ref):
    # v_ref: (tn, H) f32 tile of V ; inv_ref: (1, H) f32 grid-resident accumulator.
    j = pl.program_id(0)

    @pl.when(j == 0)
    def _init():
        inv_ref[...] = jnp.zeros_like(inv_ref)

    v = v_ref[...]
    inv_ref[...] += jnp.sum(v * v, axis=0, keepdims=True)

    @pl.when(j == pl.num_programs(0) - 1)
    def _finalize():
        # Exact reciprocal of a one-time (1, H) vector.  NOTE: no epsilon,
        # exactly like the PyTorch module (inf/nan if a column of V is all-zero).
        inv_ref[...] = 1.0 / inv_ref[...]


# --------------------------------------------------------------------------
# Main kernel: out_tile = U_scaled_tile @ V_T_tile   (pure MXU, f32 acc)
# --------------------------------------------------------------------------
def _radial_matmul_kernel(u_ref, vt_ref, o_ref):
    # u_ref:  (tm, H) bf16, already scaled by inv_norm in the wrapper.
    # vt_ref: (H, tn) bf16, pre-transposed V (natural MXU RHS layout).
    # o_ref:  (tm, tn) f32, lane-dense output tile.
    o_ref[...] = jnp.dot(u_ref[...], vt_ref[...],
                         preferred_element_type=jnp.float32)


# --------------------------------------------------------------------------
# Wrapper
# --------------------------------------------------------------------------
def two_layer_radial(U, V, *, tm=None, tn=None, mxu_dtype=jnp.bfloat16):
    """U: (M, H) f32, V: (N, H) f32 -> out: (M, N) f32.  (x is unused by the module.)"""
    M, H = U.shape
    N, Hv = V.shape
    assert H == Hv, "U and V must share the hidden dimension"

    itemsize = jnp.dtype(mxu_dtype).itemsize

    # Lane-dense output columns (multiple of 128); rows rounded to 16 for bf16
    # sublane packing.  Large tm cuts V^T HBM re-streaming (once per i block).
    if tn is None:
        tn = _pick_tile(N, (512, 256, 128), 128)
    if tm is None:
        tm = _pick_tile(M, (512, 256, 128, 64, 32, 16), 16)

    def vmem_bytes(tm_, tn_):
        # double-buffered inputs + double-buffered f32 output tile
        return 2 * (tm_ * H + tn_ * H) * itemsize + 2 * tm_ * tn_ * 4

    VMEM_BUDGET = 40 * 1024 * 1024  # conservative across v5e/v6e/v7x
    while vmem_bytes(tm, tn) > VMEM_BUDGET and tm > 64:
        tm = max(64, _round_up(tm // 2, 16))
    while vmem_bytes(tm, tn) > VMEM_BUDGET and tn > 128:
        tn = max(128, _round_up(tn // 2, 128))

    Mp = _round_up(M, tm)
    Np = _round_up(N, tn)

    # Zero rows change neither the column norms nor the valid output region.
    U_p = jnp.pad(U, ((0, Mp - M), (0, 0))) if Mp != M else U
    V_p = jnp.pad(V, ((0, Np - N), (0, 0))) if Np != N else V

    # ---- prologue: (1, H) reciprocal column-norms over the FULL N axis ----
    inv_norm = pl.pallas_call(
        _inv_col_norm_kernel,
        out_shape=jax.ShapeDtypeStruct((1, H), jnp.float32),
        grid_spec=pltpu.PrefetchScalarGridSpec(
            num_scalar_prefetch=0,
            grid=(Np // tn,),
            in_specs=[pl.BlockSpec((tn, H), lambda j: (j, 0))],
            out_specs=pl.BlockSpec((1, H), lambda j: (0, 0)),
        ),
        compiler_params=pltpu.CompilerParams(
            dimension_semantics=("arbitrary",),  # reduction axis -> accumulator
        ),
        cost_estimate=pl.CostEstimate(
            flops=2 * Np * H,
            transcendentals=H,
            bytes_accessed=Np * H * 4 + H * 4,
        ),
    )(V_p)

    # Perf item #1: fold 1/||V[:,h]||^2 into U in f32, then cast ONCE.  This
    # fuses with the pre-existing f32->bf16 cast (zero extra HBM traffic) and
    # removes the per-grid-step upcast/mul/downcast from the MXU loop.
    U_s = (U_p * inv_norm).astype(mxu_dtype)
    # Perf item #2: pre-transpose V so the kernel's RHS contracts on dim 0
    # (no per-step XLU transpose competing with vmatmul for extended slots).
    V_T = V_p.T.astype(mxu_dtype)

    # Perf item #7: account for V^T being re-streamed once per i block.
    v_restream_elems = (Mp // tm) * Np * H

    compiler_kwargs = dict(dimension_semantics=("parallel", "parallel"))
    est = vmem_bytes(tm, tn)
    if est > 14 * 1024 * 1024:
        # v5e's default scoped VMEM is only 16 MiB; raise with headroom but stay
        # under every chip's physical capacity (64 MiB per TC on v7x).
        compiler_kwargs["vmem_limit_bytes"] = int(min(est + (4 << 20), 48 << 20))

    out_p = pl.pallas_call(
        _radial_matmul_kernel,
        out_shape=jax.ShapeDtypeStruct((Mp, Np), jnp.float32),
        grid_spec=pltpu.PrefetchScalarGridSpec(
            num_scalar_prefetch=0,
            grid=(Mp // tm, Np // tn),
            in_specs=[
                pl.BlockSpec((tm, H), lambda i, j: (i, 0)),   # U tile (resident per i)
                pl.BlockSpec((H, tn), lambda i, j: (0, j)),   # V^T tile (streams over j)
            ],
            out_specs=pl.BlockSpec((tm, tn), lambda i, j: (i, j)),
        ),
        compiler_params=pltpu.CompilerParams(**compiler_kwargs),
        cost_estimate=pl.CostEstimate(
            flops=2 * Mp * Np * H,
            transcendentals=0,
            bytes_accessed=(Mp * H + v_restream_elems) * itemsize + Mp * Np * 4,
        ),
    )(U_s, V_T)

    return out_p[:M, :N]


def two_layer_radial_ref(U, V):
    """Pure-JAX f32 reference mirroring the PyTorch forward exactly."""
    V_T = V.T
    row_norm_square = jnp.sum(jnp.square(V_T), axis=1) - 0.0
    g_V_T = V_T / row_norm_square[:, None]
    return U @ g_V_T


if __name__ == "__main__":
    key = jax.random.PRNGKey(0)
    k_u, k_v, k_x = jax.random.split(key, 3)

    # Small, module-consistent shapes: hidden H=32, U rows M=8, V rows N=16.
    M, H, N = 8, 32, 16
    init_U = jax.random.normal(k_u, (M, H), dtype=jnp.float32)
    init_V = jax.random.normal(k_v, (N, H), dtype=jnp.float32)

    # x is accepted by the PyTorch forward but never used; kept for parity.
    x = jax.random.normal(k_x, (2, 4, 16, 16), dtype=jnp.float32)  # unused

    fwd = jax.jit(two_layer_radial)  # lets XLA fuse the scale+cast / transpose+cast
    out = jax.block_until_ready(fwd(init_U, init_V))
    ref = two_layer_radial_ref(init_U, init_V)

    assert out.shape == (M, N)
    # bf16 MXU operands with f32 accumulation -> modest tolerance vs f32 reference.
    assert jnp.allclose(out, ref, atol=3e-2, rtol=3e-2), "mismatch vs reference"

    print("KERNEL_OK")
</pallas_src>

<mosaic_0001>
module attributes {stable_mosaic.version = 11 : i64} {
  func.func @_radial_matmul_kernel(%arg0: i32, %arg1: i32, %arg2: memref<16x32xbf16, #tpu.memory_space<vmem>>, %arg3: memref<32x128xbf16, #tpu.memory_space<vmem>>, %arg4: memref<16x128xf32, #tpu.memory_space<vmem>>) attributes {dimension_semantics = [#tpu.dimension_semantics<parallel>, #tpu.dimension_semantics<parallel>], iteration_bounds = array<i64: 1, 1>, scalar_prefetch = 0 : i64, scratch_operands = 0 : i64, tpu.core_type = #tpu.core_type<tc>, window_params = [{transform_indices = @transform_0, window_bounds = array<i64: 16, 32>}, {transform_indices = @transform_1, window_bounds = array<i64: 32, 128>}, {transform_indices = @transform_2, window_bounds = array<i64: 16, 128>}]} {
    %c0 = arith.constant 0 : index
    %c0_0 = arith.constant 0 : index
    %0 = vector.load %arg2[%c0, %c0_0] : memref<16x32xbf16, #tpu.memory_space<vmem>>, vector<16x32xbf16>
    %c0_1 = arith.constant 0 : index
    %c0_2 = arith.constant 0 : index
    %1 = vector.load %arg3[%c0_1, %c0_2] : memref<32x128xbf16, #tpu.memory_space<vmem>>, vector<32x128xbf16>
    %cst = arith.constant dense<0.000000e+00> : vector<16x128xf32>
    %2 = tpu.matmul %0, %1, %cst {dimension_numbers = #tpu.dot_dimension_numbers<[1], [0], [0], [1], [0, 0, 1, 1], [], []>} : vector<16x32xbf16>, vector<32x128xbf16>, vector<16x128xf32> -> vector<16x128xf32>
    %c0_3 = arith.constant 0 : index
    %c0_4 = arith.constant 0 : index
    %3 = vector.load %arg4[%c0_3, %c0_4] : memref<16x128xf32, #tpu.memory_space<vmem>>, vector<16x128xf32>
    tpu.vector_store %arg4[%c0_3, %c0_4], %2 {strides = array<i32>} : memref<16x128xf32, #tpu.memory_space<vmem>>, vector<16x128xf32>,
    return
  }
  func.func @transform_0(%arg0: i32, %arg1: i32) -> (i32, i32) {
    %c0_i32 = arith.constant 0 : i32
    %c0_i32_0 = arith.constant 0 : i32
    return %arg0, %c0_i32 : i32, i32
  }
  func.func @transform_1(%arg0: i32, %arg1: i32) -> (i32, i32) {
    %c0_i32 = arith.constant 0 : i32
    %c0_i32_0 = arith.constant 0 : i32
    return %c0_i32, %arg1 : i32, i32
  }
  func.func @transform_2(%arg0: i32, %arg1: i32) -> (i32, i32) {
    %c0_i32 = arith.constant 0 : i32
    return %arg0, %arg1 : i32, i32
  }
}

module attributes {stable_mosaic.version = 11 : i64} {
  func.func @_inv_col_norm_kernel(%arg0: i32, %arg1: memref<128x32xf32, #tpu.memory_space<vmem>>, %arg2: memref<1x32xf32, #tpu.memory_space<vmem>>) attributes {dimension_semantics = [#tpu.dimension_semantics<arbitrary>], iteration_bounds = array<i64: 1>, scalar_prefetch = 0 : i64, scratch_operands = 0 : i64, tpu.core_type = #tpu.core_type<tc>, window_params = [{transform_indices = @transform_0, window_bounds = array<i64: 128, 32>}, {pipeline_mode = #tpu.pipeline_mode<synchronous>, transform_indices = @transform_1, window_bounds = array<i64: 1, 32>}]} {
    %c0_i32 = arith.constant 0 : i32
    %0 = arith.cmpi eq, %arg0, %c0_i32 : i32
    %1 = arith.extui %0 : i1 to i32
    %c0_i32_0 = arith.constant 0 : i32
    %2 = arith.cmpi ne, %1, %c0_i32_0 : i32
    scf.if %2 {
      %cst_8 = arith.constant 0.000000e+00 : f32
      %13 = vector.broadcast %cst_8 : f32 to vector<1x32xf32>
      %c0_9 = arith.constant 0 : index
      %c0_10 = arith.constant 0 : index
      %14 = vector.load %arg2[%c0_9, %c0_10] : memref<1x32xf32, #tpu.memory_space<vmem>>, vector<1x32xf32>
      tpu.vector_store %arg2[%c0_9, %c0_10], %13 {strides = array<i32>} : memref<1x32xf32, #tpu.memory_space<vmem>>, vector<1x32xf32>,
    } else {
    }
    %c0 = arith.constant 0 : index
    %c0_1 = arith.constant 0 : index
    %3 = vector.load %arg1[%c0, %c0_1] : memref<128x32xf32, #tpu.memory_space<vmem>>, vector<128x32xf32>
    %c0_2 = arith.constant 0 : index
    %c0_3 = arith.constant 0 : index
    %4 = vector.load %arg2[%c0_2, %c0_3] : memref<1x32xf32, #tpu.memory_space<vmem>>, vector<1x32xf32>
    %5 = arith.mulf %3, %3 : vector<128x32xf32>
    %cst = arith.constant dense<0.000000e+00> : vector<32xf32>
    %6 = vector.multi_reduction <add>, %5, %cst [0] : vector<128x32xf32> to vector<32xf32>
    %7 = vector.shape_cast %6 : vector<32xf32> to vector<1x32xf32>
    %8 = arith.addf %4, %7 : vector<1x32xf32>
    %c0_4 = arith.constant 0 : index
    %c0_5 = arith.constant 0 : index
    %9 = vector.load %arg2[%c0_4, %c0_5] : memref<1x32xf32, #tpu.memory_space<vmem>>, vector<1x32xf32>
    tpu.vector_store %arg2[%c0_4, %c0_5], %8 {strides = array<i32>} : memref<1x32xf32, #tpu.memory_space<vmem>>, vector<1x32xf32>,
    %c0_i32_6 = arith.constant 0 : i32
    %10 = arith.cmpi eq, %arg0, %c0_i32_6 : i32
    %11 = arith.extui %10 : i1 to i32
    %c0_i32_7 = arith.constant 0 : i32
    %12 = arith.cmpi ne, %11, %c0_i32_7 : i32
    scf.if %12 {
      %c0_8 = arith.constant 0 : index
      %c0_9 = arith.constant 0 : index
      %13 = vector.load %arg2[%c0_8, %c0_9] : memref<1x32xf32, #tpu.memory_space<vmem>>, vector<1x32xf32>
      %cst_10 = arith.constant 1.000000e+00 : f32
      %14 = vector.broadcast %cst_10 : f32 to vector<1x32xf32>
      %15 = arith.divf %14, %13 : vector<1x32xf32>
      %c0_11 = arith.constant 0 : index
      %c0_12 = arith.constant 0 : index
      %16 = vector.load %arg2[%c0_11, %c0_12] : memref<1x32xf32, #tpu.memory_space<vmem>>, vector<1x32xf32>
      tpu.vector_store %arg2[%c0_11, %c0_12], %15 {strides = array<i32>} : memref<1x32xf32, #tpu.memory_space<vmem>>, vector<1x32xf32>,
    } else {
    }
    return
  }
  func.func @transform_0(%arg0: i32) -> (i32, i32) {
    %c0_i32 = arith.constant 0 : i32
    %c0_i32_0 = arith.constant 0 : i32
    return %arg0, %c0_i32 : i32, i32
  }
  func.func @transform_1(%arg0: i32) -> (i32, i32) {
    %c0_i32 = arith.constant 0 : i32
    %c0_i32_0 = arith.constant 0 : i32
    %c0_i32_1 = arith.constant 0 : i32
    return %c0_i32, %c0_i32_0 : i32, i32
  }
}

</mosaic_0001>

<bundles_post_ra>
// kernel: two_layer_radial.3
= control target key start
LH: loop header
LB: loop body
LE: loop exit
PB: predicated region body
PF: predicated region fallthrough
CT: control target
= control target key end

     0   :  { %vm35_vm0 = vcmask 261120   ;;  %s105_s1 = inlined_call_operand.vmem [shape: bf16[32,128], index: 1, kind: input, shape index: {}]   ;;  %s106_s0 = inlined_call_operand.vmem [shape: bf16[16,32], index: 0, kind: input, shape index: {}]   ;;  %s107_s2 = inlined_call_operand.vmem [shape: f32[16,128], index: 2, kind: output, shape index: {}]  }
   0x1   :  { %v74_v0 = vld [vmem:[%s105_s1 + $0x8] sm:$0xff]  ;;  %v73_v1 = vld [vmem:[%s105_s1] sm:$0xff] }
   0x2   :  { %45 = vmatpush.bf16.msra.mxu0 %v74_v0  ;;  %v72_v2 = vld [vmem:[%s106_s0] sm:$0xff] }
   0x6   :  { %46 = vmatpush.bf16.msra.mxu0 %v73_v1 }
   0x9   :  { %71 = vmatmul.msk.bf16.vlgmr.msra.gmra.mxu0 %vm35_vm0, %v72_v2 }
  0x86   :  { %v48_v3 = vpop.f32.mrf.mxu0 }
  0x87   :  { %53 = vst [vmem:[%s107_s2] sm:$0xff] %v48_v3 }
  0x8e   :  { %v50_v4 = vpop.f32.mrf.mxu0 }
  0x8f   :  { %54 = vst [vmem:[%s107_s2 + $0x8] sm:$0xff] %v50_v4 }

// kernel: two_layer_radial.2
= control target key start
LH: loop header
LB: loop body
LE: loop exit
PB: predicated region body
PF: predicated region fallthrough
CT: control target
= control target key end

     0   :  { %vm12_vm0 = vcmask 253952   ;;  %v115_v0 = vmov 0.0   ;;  %vm47_vm1 = vcmask 261120   ;;  %s208_s1 = inlined_call_operand.vmem [shape: f32[1,32], index: 1, kind: output, shape index: {}]   ;;  %s209_s0 = inlined_call_operand.vmem [shape: f32[128,32], index: 0, kind: input, shape index: {}]  }
   0x1   :  { %13 = vst.msk [vmem:[%s208_s1] sm:$0x1] %vm12_vm0, %v115_v0  ;;  %v14_v1 = vld [vmem:[%s209_s0] sm:$0xff]  ;;  %v15_v2 = vld [vmem:[%s209_s0 + $0x8] sm:$0xff]  ;;  %v16_v3 = vld [vmem:[%s209_s0 + $0x10] sm:$0xff] }
   0x2   :  { %v17_v4 = vld [vmem:[%s209_s0 + $0x18] sm:$0xff]  ;;  %v18_v5 = vld [vmem:[%s209_s0 + $0x20] sm:$0xff]  ;;  %v31_v6 = vmul.f32 %v14_v1, %v14_v1  ;;  %v32_v7 = vmul.f32 %v15_v2, %v15_v2  ;;  %v33_v8 = vmul.f32 %v16_v3, %v16_v3  ;;  %v19_v10 = vld [vmem:[%s209_s0 + $0x28] sm:$0xff] }
   0x3   :  { %v34_v9 = vmul.f32 %v17_v4, %v17_v4  ;;  %v35_v12 = vmul.f32 %v18_v5, %v18_v5  ;;  %v20_v14 = vld [vmem:[%s209_s0 + $0x30] sm:$0xff]  ;;  %v36_v16 = vmul.f32 %v19_v10, %v19_v10  ;;  %v21_v19 = vld [vmem:[%s209_s0 + $0x38] sm:$0xff]  ;;  %v22_v23 = vld [vmem:[%s209_s0 + $0x40] sm:$0xff] }
   0x4   :  { %v48_v11 = vsel %vm47_vm1, %v31_v6, 0.0  ;;  %v49_v13 = vsel %vm47_vm1, %v32_v7, 0.0  ;;  %v51_v17 = vsel %vm47_vm1, %v33_v8, 0.0  ;;  %v37_v21 = vmul.f32 %v20_v14, %v20_v14  ;;  %v23_v27 = vld [vmem:[%s209_s0 + $0x48] sm:$0xff]  ;;  %v24_v31 = vld [vmem:[%s209_s0 + $0x50] sm:$0xff]  ;;  %v25_v35 = vld [vmem:[%s209_s0 + $0x58] sm:$0xff] }
   0x5   :  { %v50_v15 = vadd.f32 %v49_v13, %v48_v11  ;;  %v53_v18 = vsel %vm47_vm1, %v34_v9, 0.0  ;;  %v55_v22 = vsel %vm47_vm1, %v35_v12, 0.0  ;;  %v38_v25 = vmul.f32 %v21_v19, %v21_v19  ;;  %v26_v39 = vld [vmem:[%s209_s0 + $0x60] sm:$0xff]  ;;  %v27_v43 = vld [vmem:[%s209_s0 + $0x68] sm:$0xff]  ;;  %v28_v47 = vld [vmem:[%s209_s0 + $0x70] sm:$0xff] }
   0x6   :  { %v57_v26 = vsel %vm47_vm1, %v36_v16, 0.0  ;;  %v39_v29 = vmul.f32 %v22_v23, %v22_v23  ;;  %v59_v30 = vsel %vm47_vm1, %v37_v21, 0.0  ;;  %v40_v33 = vmul.f32 %v23_v27, %v23_v27  ;;  %v29_v51 = vld [vmem:[%s209_s0 + $0x78] sm:$0xff] }
   0x7   :  { %v52_v20 = vadd.f32 %v51_v17, %v50_v15  ;;  %v61_v34 = vsel %vm47_vm1, %v38_v25, 0.0  ;;  %v41_v37 = vmul.f32 %v24_v31, %v24_v31  ;;  %v42_v41 = vmul.f32 %v25_v35, %v25_v35 }
   0x8   :  { %v63_v38 = vsel %vm47_vm1, %v39_v29, 0.0  ;;  %v65_v42 = vsel %vm47_vm1, %v40_v33, 0.0  ;;  %v43_v45 = vmul.f32 %v26_v39, %v26_v39  ;;  %v44_v49 = vmul.f32 %v27_v43, %v27_v43  ;;  %v30_v5 = vld [vmem:[%s208_s1] sm:$0x1] }
   0x9   :  { %v54_v24 = vadd.f32 %v53_v18, %v52_v20  ;;  %v67_v46 = vsel %vm47_vm1, %v41_v37, 0.0  ;;  %v69_v50 = vsel %vm47_vm1, %v42_v41, 0.0  ;;  %v45_v53 = vmul.f32 %v28_v47, %v28_v47 }
   0xa   :  { %v71_v54 = vsel %vm47_vm1, %v43_v45, 0.0  ;;  %v46_v56 = vmul.f32 %v29_v51, %v29_v51  ;;  %v73_v57 = vsel %vm47_vm1, %v44_v49, 0.0 }
   0xb   :  { %v56_v28 = vadd.f32 %v55_v22, %v54_v24  ;;  %v75_v59 = vsel %vm47_vm1, %v45_v53, 0.0 }
   0xc   :  { %v77_v61 = vsel %vm47_vm1, %v46_v56, 0.0 }
   0xd   :  { %v58_v32 = vadd.f32 %v57_v26, %v56_v28 }
   0xf   :  { %v60_v36 = vadd.f32 %v59_v30, %v58_v32 }
  0x11   :  { %v62_v40 = vadd.f32 %v61_v34, %v60_v36 }
  0x13   :  { %v64_v44 = vadd.f32 %v63_v38, %v62_v40 }
  0x15   :  { %v66_v48 = vadd.f32 %v65_v42, %v64_v44 }
  0x17   :  { %v68_v52 = vadd.f32 %v67_v46, %v66_v48 }
  0x19   :  { %v70_v55 = vadd.f32 %v69_v50, %v68_v52 }
  0x1b   :  { %v72_v58 = vadd.f32 %v71_v54, %v70_v55 }
  0x1d   :  { %v74_v60 = vadd.f32 %v73_v57, %v72_v58 }
  0x1f   :  { %v76_v62 = vadd.f32 %v75_v59, %v74_v60 }
  0x21   :  { %v78_v63 = vadd.f32 %v77_v61, %v76_v62 }
  0x23   :  { %v79_v0 = vrot.slane %v78_v63, 4 }
  0x25   :  { %v80_v1 = vadd.f32 %v79_v0, %v78_v63 }
  0x27   :  { %v81_v2 = vrot.slane %v80_v1, 2 }
  0x29   :  { %v82_v3 = vadd.f32 %v81_v2, %v80_v1 }
  0x2b   :  { %v83_v4 = vrot.slane %v82_v3, 1 }
  0x2d   :  { %v84_v6 = vadd.f32 %v83_v4, %v82_v3 }
  0x2f   :  { %v85_v7 = vadd.f32 %v84_v6, %v30_v5 }
  0x31   :  { %87 = vst.msk [vmem:[%s208_s1] sm:$0x1] %vm12_vm0, %v85_v7 }
  0x38   :  { %v91_v8 = vld [vmem:[%s208_s1] sm:$0x1] }
  0x39   :  { %113 = vrcp.f32 %v91_v8  ;;  %v103_v12 = vand.u32 2147483648, %v91_v8  ;;  %v101_v14 = vand.u32 2147483647, %v91_v8  ;;  %vm97_vm3 = vweird.f32 %v91_v8 }
  0x3b   :  { %v104_v16 = vor.u32 1.1754944e-38, %v103_v12  ;;  %vm102_vm5 = vcmp.eq.f32.partialorder %v101_v14, 8.507059e+37 }
  0x3f   :  { %v114_v9 = vpop.eup %113 }
  0x40   :  { %v93_v10 = vmul.f32 %v114_v9, %v91_v8  ;;  %vm98_vm2 = vweird.f32 %v114_v9 }
  0x41   :  { %vm99_vm4 = vmor %vm97_vm3, %vm98_vm2 }
  0x42   :  { %v94_v11 = vsub.f32 1.0, %v93_v10 }
  0x44   :  { %v95_v13 = vmul.f32 %v114_v9, %v94_v11 }
  0x46   :  { %v96_v15 = vadd.f32 %v114_v9, %v95_v13 }
  0x48   :  { %v100_v17 = vsel %vm99_vm4, %v114_v9, %v96_v15 }
  0x49   :  { %v105_v18 = vsel %vm102_vm5, %v104_v16, %v100_v17 }
  0x4a   :  { %107 = vst.msk [vmem:[%s208_s1] sm:$0x1] %vm12_vm0, %v105_v18 }

</bundles_post_ra>
